<compile_context>
chip_gen: v5e
topology: v5e:2x2
jax: 0.10.0
libtpu: 0.0.40
codegen_flags: <defaults>
</compile_context>

<pallas_src>
import functools

import jax
import jax.numpy as jnp
from jax.experimental import pallas as pl
from jax.experimental.pallas import tpu as pltpu

KS = 7           # spatial-attention kernel size (PyTorch default)
PAD = KS // 2    # = 3


def _cbam_kernel(x_ref, w1_ref, w2_ref, k_ref, out_ref, *, BB, C):
    """Fused CBAM forward for BB batch elements, lane-dense (BB*C, HW) layout.

    x_ref:   (BB*C, HW)          input features (flattened spatial on lanes)
    w1_ref:  (BB*Cr, BB*C)       block-diagonal first 1x1-conv weight (no bias)
    w2_ref:  (BB*C, BB*Cr)       block-diagonal second 1x1-conv weight (no bias)
    k_ref:   (2*HW, HW)          spatial-conv operator matrix (weights+padding)
    out_ref: (BB*C, HW)          final CBAM output
    """
    x2 = x_ref[...]                                        # (BB*C, HW) f32

    # ---- Channel attention (per batch via block-diagonal MLP weights) ------
    avg = jnp.mean(x2, axis=1, keepdims=True)              # (BB*C, 1)
    mx = jnp.max(x2, axis=1, keepdims=True)                # (BB*C, 1)
    pooled = jnp.concatenate([avg, mx], axis=1)            # (BB*C, 2)
    h = jnp.maximum(
        jnp.dot(w1_ref[...], pooled, preferred_element_type=jnp.float32), 0.0
    )                                                      # (BB*Cr, 2)
    o = jnp.dot(w2_ref[...], h, preferred_element_type=jnp.float32)  # (BB*C, 2)
    ca = jax.nn.sigmoid(o[:, 0:1] + o[:, 1:2])             # (BB*C, 1)
    xca = x2 * ca                                          # (BB*C, HW)

    # ---- Spatial attention: 7x7 "same" conv as one MXU matmul --------------
    # Per batch: row b of `maps` is [mean-over-C map | max-over-C map], each
    # flattened over HW.  sa_logits = maps @ K does the whole padded conv.
    map_rows = []
    for b in range(BB):                                    # static unroll
        blk = xca[b * C:(b + 1) * C, :]                    # (C, HW)
        map_rows.append(jnp.concatenate(
            [jnp.mean(blk, axis=0, keepdims=True),
             jnp.max(blk, axis=0, keepdims=True)], axis=1))  # (1, 2*HW)
    maps = jnp.concatenate(map_rows, axis=0)               # (BB, 2*HW)
    sa = jax.nn.sigmoid(
        jnp.dot(maps, k_ref[...], preferred_element_type=jnp.float32))  # (BB, HW)

    # ---- Apply spatial gate; full-lane unmasked store -----------------------
    for b in range(BB):                                    # static unroll
        out_ref[b * C:(b + 1) * C, :] = (
            xca[b * C:(b + 1) * C, :] * sa[b:b + 1, :])


@jax.jit
def cbam_pallas(x, w1, w2, ws):
    """CBAM forward. x: (B, C, H, W) f32. Returns (B, C, H, W) f32."""
    B, C, H, W = x.shape
    HW = H * W
    Cr = w1.shape[0]

    # Grid plan: keep 2 parallel steps when B allows (both v7x TensorCores
    # busy); fold the remaining batch elements into sublanes within a step
    # (one step covers BB batches) to cut per-grid-step overhead on the
    # single-TC v5e / v6e.
    nb = 2 if (B >= 2 and B % 2 == 0) else 1
    BB = B // nb

    x2 = x.reshape(B * C, HW)                              # free layout reshape

    # Block-diagonal channel-MLP weights: per-batch shared MLP in one matmul.
    eye = jnp.eye(BB, dtype=jnp.float32)
    w1_blk = jnp.kron(eye, w1)                             # (BB*Cr, BB*C)
    w2_blk = jnp.kron(eye, w2)                             # (BB*C, BB*Cr)

    # Spatial-conv operator matrix K (2*HW, HW):
    #   K[m*HW + ri*W + ci, ro*W + co] = ws[m, di, dj] with di = ri-ro+PAD,
    #   dj = ci-co+PAD when the tap lies inside the 7x7 window; zero otherwise
    #   (which also encodes the zero "same" padding).
    ri = jnp.arange(H).reshape(H, 1, 1, 1)
    ci = jnp.arange(W).reshape(1, W, 1, 1)
    ro = jnp.arange(H).reshape(1, 1, H, 1)
    co = jnp.arange(W).reshape(1, 1, 1, W)
    di = ri - ro + PAD                                     # (H,1,H,1)
    dj = ci - co + PAD                                     # (1,W,1,W)
    valid = (di >= 0) & (di < KS) & (dj >= 0) & (dj < KS)  # (H,W,H,W)
    taps = ws[:, jnp.clip(di, 0, KS - 1), jnp.clip(dj, 0, KS - 1)]  # (2,H,W,H,W)
    K = jnp.where(valid[None], taps, 0.0).astype(jnp.float32).reshape(2 * HW, HW)

    y2 = pl.pallas_call(
        functools.partial(_cbam_kernel, BB=BB, C=C),
        out_shape=jax.ShapeDtypeStruct((B * C, HW), jnp.float32),
        grid_spec=pltpu.PrefetchScalarGridSpec(
            num_scalar_prefetch=0,
            grid=(nb,),
            in_specs=[
                pl.BlockSpec((BB * C, HW), lambda i: (i, 0)),
                pl.BlockSpec((BB * Cr, BB * C), lambda i: (0, 0)),
                pl.BlockSpec((BB * C, BB * Cr), lambda i: (0, 0)),
                pl.BlockSpec((2 * HW, HW), lambda i: (0, 0)),
            ],
            out_specs=pl.BlockSpec((BB * C, HW), lambda i: (i, 0)),
        ),
        compiler_params=pltpu.CompilerParams(
            dimension_semantics=("parallel",)),
    )(x2, w1_blk, w2_blk, K)

    return y2.reshape(B, C, H, W)


def cbam_reference(x, w1, w2, ws):
    """Pure-JAX reference matching the PyTorch module semantics."""
    # Channel attention
    avg = jnp.mean(x, axis=(2, 3))                         # (B, C)
    mx = jnp.max(x, axis=(2, 3))                           # (B, C)

    def fc(v):
        h = jnp.maximum(v @ w1.T, 0.0)
        return h @ w2.T

    ca = jax.nn.sigmoid(fc(avg) + fc(mx))[:, :, None, None]
    xca = x * ca
    # Spatial attention
    sa_avg = jnp.mean(xca, axis=1, keepdims=True)
    sa_max = jnp.max(xca, axis=1, keepdims=True)
    cat = jnp.concatenate([sa_avg, sa_max], axis=1)        # (B, 2, H, W)
    conv = jax.lax.conv_general_dilated(
        cat, ws[None], window_strides=(1, 1),
        padding=((PAD, PAD), (PAD, PAD)),
        dimension_numbers=("NCHW", "OIHW", "NCHW"))
    sa = jax.nn.sigmoid(conv)                              # (B, 1, H, W)
    return xca * sa


if __name__ == "__main__":
    # Small shapes consistent with CBAM: dim=32, reduction=4 -> hidden=8.
    B, C, H, W = 2, 32, 16, 16
    reduction = 4
    Cr = C // reduction

    key = jax.random.PRNGKey(0)
    k1, k2, k3, k4 = jax.random.split(key, 4)
    x = jax.random.normal(k1, (B, C, H, W), dtype=jnp.float32)
    # Deterministic synthetic parameters (1x1 conv weights squeezed to 2D,
    # 7x7 spatial conv weight with 2 input channels, 1 output channel).
    w1 = 0.1 * jax.random.normal(k2, (Cr, C), dtype=jnp.float32)
    w2 = 0.1 * jax.random.normal(k3, (C, Cr), dtype=jnp.float32)
    ws = 0.1 * jax.random.normal(k4, (2, KS, KS), dtype=jnp.float32)

    y = jax.block_until_ready(cbam_pallas(x, w1, w2, ws))
    y_ref = jax.block_until_ready(cbam_reference(x, w1, w2, ws))

    assert y.shape == (B, C, H, W) and y.dtype == jnp.float32
    # Tolerance accounts for MXU pass-precision differences between the
    # in-kernel operator-matrix matmul and XLA's conv in the reference.
    assert jnp.allclose(y, y_ref, rtol=1e-3, atol=1e-3), (
        float(jnp.max(jnp.abs(y - y_ref))))
    print("KERNEL_OK")
</pallas_src>

<mosaic_0001>
module attributes {stable_mosaic.version = 11 : i64} {
  func.func @_cbam_kernel(%arg0: i32, %arg1: memref<32x256xf32, #tpu.memory_space<vmem>>, %arg2: memref<8x32xf32, #tpu.memory_space<vmem>>, %arg3: memref<32x8xf32, #tpu.memory_space<vmem>>, %arg4: memref<512x256xf32, #tpu.memory_space<vmem>>, %arg5: memref<32x256xf32, #tpu.memory_space<vmem>>) attributes {dimension_semantics = [#tpu.dimension_semantics<parallel>], iteration_bounds = array<i64: 2>, scalar_prefetch = 0 : i64, scratch_operands = 0 : i64, tpu.core_type = #tpu.core_type<tc>, window_params = [{transform_indices = @transform_0, window_bounds = array<i64: 32, 256>}, {pipeline_mode = #tpu.pipeline_mode<synchronous>, transform_indices = @transform_1, window_bounds = array<i64: 8, 32>}, {pipeline_mode = #tpu.pipeline_mode<synchronous>, transform_indices = @transform_2, window_bounds = array<i64: 32, 8>}, {pipeline_mode = #tpu.pipeline_mode<synchronous>, transform_indices = @transform_3, window_bounds = array<i64: 512, 256>}, {transform_indices = @transform_4, window_bounds = array<i64: 32, 256>}]} {
    %c0 = arith.constant 0 : index
    %c0_0 = arith.constant 0 : index
    %0 = vector.load %arg1[%c0, %c0_0] : memref<32x256xf32, #tpu.memory_space<vmem>>, vector<32x256xf32>
    %cst = arith.constant dense<0.000000e+00> : vector<32xf32>
    %1 = vector.multi_reduction <add>, %0, %cst [1] : vector<32x256xf32> to vector<32xf32>
    %2 = vector.shape_cast %1 : vector<32xf32> to vector<32x1xf32>
    %cst_1 = arith.constant 2.560000e+02 : f32
    %3 = vector.broadcast %cst_1 : f32 to vector<32x1xf32>
    %4 = arith.divf %2, %3 : vector<32x1xf32>
    %cst_2 = arith.constant dense<0xFF800000> : vector<32xf32>
    %5 = vector.multi_reduction <maximumf>, %0, %cst_2 [1] : vector<32x256xf32> to vector<32xf32>
    %6 = vector.shape_cast %5 : vector<32xf32> to vector<32x1xf32>
    %7 = tpu.concatenate %4, %6 in 1 : vector<32x1xf32>, vector<32x1xf32> -> vector<32x2xf32>
    %c0_3 = arith.constant 0 : index
    %c0_4 = arith.constant 0 : index
    %8 = vector.load %arg2[%c0_3, %c0_4] : memref<8x32xf32, #tpu.memory_space<vmem>>, vector<8x32xf32>
    %cst_5 = arith.constant dense<0.000000e+00> : vector<8x2xf32>
    %9 = tpu.matmul %8, %7, %cst_5 {dimension_numbers = #tpu.dot_dimension_numbers<[1], [0], [0], [1], [0, 0, 1, 1], [], []>} : vector<8x32xf32>, vector<32x2xf32>, vector<8x2xf32> -> vector<8x2xf32>
    %cst_6 = arith.constant 0.000000e+00 : f32
    %10 = vector.broadcast %cst_6 : f32 to vector<8x2xf32>
    %11 = arith.maximumf %9, %10 : vector<8x2xf32>
    %c0_7 = arith.constant 0 : index
    %c0_8 = arith.constant 0 : index
    %12 = vector.load %arg3[%c0_7, %c0_8] : memref<32x8xf32, #tpu.memory_space<vmem>>, vector<32x8xf32>
    %cst_9 = arith.constant dense<0.000000e+00> : vector<32x2xf32>
    %13 = tpu.matmul %12, %11, %cst_9 {dimension_numbers = #tpu.dot_dimension_numbers<[1], [0], [0], [1], [0, 0, 1, 1], [], []>} : vector<32x8xf32>, vector<8x2xf32>, vector<32x2xf32> -> vector<32x2xf32>
    %14 = vector.extract_strided_slice %13 {offsets = [0, 0], sizes = [32, 1], strides = [1, 1]} : vector<32x2xf32> to vector<32x1xf32>
    %15 = vector.extract_strided_slice %13 {offsets = [0, 1], sizes = [32, 1], strides = [1, 1]} : vector<32x2xf32> to vector<32x1xf32>
    %16 = arith.addf %14, %15 : vector<32x1xf32>
    %17 = arith.negf %16 : vector<32x1xf32>
    %18 = math.exp %17 : vector<32x1xf32>
    %cst_10 = arith.constant 1.000000e+00 : f32
    %19 = vector.broadcast %cst_10 : f32 to vector<32x1xf32>
    %20 = arith.addf %19, %18 : vector<32x1xf32>
    %21 = arith.divf %19, %20 : vector<32x1xf32>
    %22 = vector.broadcast %21 : vector<32x1xf32> to vector<32x256xf32>
    %23 = arith.mulf %0, %22 : vector<32x256xf32>
    %cst_11 = arith.constant dense<0.000000e+00> : vector<256xf32>
    %24 = vector.multi_reduction <add>, %23, %cst_11 [0] : vector<32x256xf32> to vector<256xf32>
    %25 = vector.shape_cast %24 : vector<256xf32> to vector<1x256xf32>
    %cst_12 = arith.constant 3.200000e+01 : f32
    %26 = vector.broadcast %cst_12 : f32 to vector<1x256xf32>
    %27 = arith.divf %25, %26 : vector<1x256xf32>
    %cst_13 = arith.constant dense<0xFF800000> : vector<256xf32>
    %28 = vector.multi_reduction <maximumf>, %23, %cst_13 [0] : vector<32x256xf32> to vector<256xf32>
    %29 = vector.shape_cast %28 : vector<256xf32> to vector<1x256xf32>
    %30 = tpu.concatenate %27, %29 in 1 : vector<1x256xf32>, vector<1x256xf32> -> vector<1x512xf32>
    %c0_14 = arith.constant 0 : index
    %c0_15 = arith.constant 0 : index
    %31 = vector.load %arg4[%c0_14, %c0_15] : memref<512x256xf32, #tpu.memory_space<vmem>>, vector<512x256xf32>
    %cst_16 = arith.constant dense<0.000000e+00> : vector<1x256xf32>
    %32 = tpu.matmul %30, %31, %cst_16 {dimension_numbers = #tpu.dot_dimension_numbers<[1], [0], [0], [1], [0, 0, 1, 1], [], []>} : vector<1x512xf32>, vector<512x256xf32>, vector<1x256xf32> -> vector<1x256xf32>
    %33 = arith.negf %32 : vector<1x256xf32>
    %34 = math.exp %33 : vector<1x256xf32>
    %cst_17 = arith.constant 1.000000e+00 : f32
    %35 = vector.broadcast %cst_17 : f32 to vector<1x256xf32>
    %36 = arith.addf %35, %34 : vector<1x256xf32>
    %37 = arith.divf %35, %36 : vector<1x256xf32>
    %38 = vector.broadcast %37 : vector<1x256xf32> to vector<32x256xf32>
    %39 = arith.mulf %23, %38 : vector<32x256xf32>
    %c0_18 = arith.constant 0 : index
    %c0_19 = arith.constant 0 : index
    %40 = vector.load %arg5[%c0_18, %c0_19] : memref<32x256xf32, #tpu.memory_space<vmem>>, vector<32x256xf32>
    tpu.vector_store %arg5[%c0_18, %c0_19], %39 {strides = array<i32>} : memref<32x256xf32, #tpu.memory_space<vmem>>, vector<32x256xf32>,
    return
  }
  func.func @transform_0(%arg0: i32) -> (i32, i32) {
    %c0_i32 = arith.constant 0 : i32
    %c0_i32_0 = arith.constant 0 : i32
    return %arg0, %c0_i32 : i32, i32
  }
  func.func @transform_1(%arg0: i32) -> (i32, i32) {
    %c0_i32 = arith.constant 0 : i32
    %c0_i32_0 = arith.constant 0 : i32
    %c0_i32_1 = arith.constant 0 : i32
    return %c0_i32, %c0_i32_0 : i32, i32
  }
  func.func @transform_2(%arg0: i32) -> (i32, i32) {
    %c0_i32 = arith.constant 0 : i32
    %c0_i32_0 = arith.constant 0 : i32
    %c0_i32_1 = arith.constant 0 : i32
    return %c0_i32, %c0_i32_0 : i32, i32
  }
  func.func @transform_3(%arg0: i32) -> (i32, i32) {
    %c0_i32 = arith.constant 0 : i32
    %c0_i32_0 = arith.constant 0 : i32
    %c0_i32_1 = arith.constant 0 : i32
    return %c0_i32, %c0_i32_0 : i32, i32
  }
  func.func @transform_4(%arg0: i32) -> (i32, i32) {
    %c0_i32 = arith.constant 0 : i32
    %c0_i32_0 = arith.constant 0 : i32
    return %arg0, %c0_i32 : i32, i32
  }
}

</mosaic_0001>

<bundles_post_ra>
// kernel: cbam_pallas.1
= control target key start
LH: loop header
LB: loop body
LE: loop exit
PB: predicated region body
PF: predicated region fallthrough
CT: control target
= control target key end

     0   :  { %s1003_s15 = smov 0   ;;  %s1510_s0 = inlined_call_operand.vmem [shape: f32[64,256], index: 0, kind: input, shape index: {}]   ;;  %s1511_s1 = inlined_call_operand.vmem [shape: f32[8,32], index: 1, kind: input, shape index: {}]   ;;  %s1512_s2 = inlined_call_operand.vmem [shape: f32[32,8], index: 2, kind: input, shape index: {}]   ;;  %s1513_s3 = inlined_call_operand.vmem [shape: f32[512,256], index: 3, kind: input, shape index: {}]   ;;  %s1514_s4 = inlined_call_operand.vmem [shape: f32[64,256], index: 4, kind: output, shape index: {}]  }
   0x1 LB: > { %s897_s16 = sadd.s32 4294967295, %s972_s15   ;;  %p901_p0 = scmp.ge.s32.totalorder %s972_s15, 1  ;;  %s972_s15 = sphi %s1003_s15, %s14_s15  }
   0x2   : > { %p164_p1 = scmp.lt.s32.totalorder %s972_s15, 3 }
   0x4   : > { %p165_p2 = pnand %p901_p0, %p164_p1 }
   0x5   : > { %s902_s17 = sshll.u32 (!%p165_p2), %s897_s16, 2  ;;  %s975_s6 = smov (!%p165_p2), 127  }
   0x6   : > { %168 = sbr.rel (%p165_p2) target bundleno = 886 (0x376), region = 36  ;;  %p193_p3 = scmp.lt.s32.totalorder (!%p165_p2), %s902_s17, 7 }
   0xb   : > { %s1516_s17 = smov (!%p193_p3, %s902_s17), 7  ;;  %v974_v16 = vmov 256.0   ;;  %vm249_vm1 = vcmask 7168   ;;  %v254_v39 = vld [vmem:[%s1511_s1] sm:$0xff]  ;;  %vm255_vm2 = vcmask 261120   ;;  %vm284_vm3 = vcmask 64512  }
   0xc   : > { %s921_s18 = sshll.u32 %s1516_s17, 4  ;;  %938 = vrcp.f32 %v974_v16  ;;  %v280_v42 = vld [vmem:[%s1512_s2] sm:$0xff]  ;;  %v281_v43 = vld [vmem:[%s1512_s2 + $0x8] sm:$0xff]  ;;  %v282_v44 = vld [vmem:[%s1512_s2 + $0x10] sm:$0xff]  ;;  %v976_v50 = vmov 0  }
   0xd   : > { %s197_s21 = scalar_lea.vmem %s1510_s0, %s921_s18  ;;  %v283_v45 = vld [vmem:[%s1512_s2 + $0x18] sm:$0xff]  ;;  %935 = vset.pattern.permute.xlu0 %v976_v50  ;;  %936 = vset.pattern.permute.xlu2 %v976_v50  ;;  %s204_s12 = scalar_lea.vmem %s1514_s4, %s921_s18 }
   0xe   : > { %v1019_v0 = vld [vmem:[%s197_s21 + $0x30] sm:$0xff]  ;;  %v1021_v1 = vld [vmem:[%s197_s21 + $0x38] sm:$0xff]  ;;  %v1023_v2 = vld [vmem:[%s197_s21 + $0x20] sm:$0xff]  ;;  %937 = vset.pattern.permute.xlu1 %v976_v50 }
   0xf   : > { %v223_v3 = vadd.f32 %v1021_v1, %v1019_v0  ;;  %v246_v4 = vmax.f32 %v1019_v0, %v1021_v1  ;;  %v1029_v5 = vld [vmem:[%s197_s21 + $0x28] sm:$0xff]  ;;  %v1033_v7 = vld [vmem:[%s197_s21 + $0x10] sm:$0xff]  ;;  %v1035_v8 = vld [vmem:[%s197_s21 + $0x18] sm:$0xff] }
  0x10   : > { %v243_v6 = vmax.f32 %v1023_v2, %v1029_v5  ;;  %v1037_v9 = vld [vmem:[%s197_s21] sm:$0xff]  ;;  %v1039_v10 = vld [vmem:[%s197_s21 + $0x8] sm:$0xff]  ;;  %v220_v11 = vadd.f32 %v1029_v5, %v1023_v2  ;;  %v217_v12 = vadd.f32 %v1035_v8, %v1033_v7  ;;  %v240_v14 = vmax.f32 %v1033_v7, %v1035_v8 }
  0x11   : > { %224 = vadd.xlane.f32.xlu0 %v223_v3  ;;  %247 = vmax.xlane.f32.xlu1 %v246_v4  ;;  %v214_v13 = vadd.f32 %v1039_v10, %v1037_v9  ;;  %v237_v15 = vmax.f32 %v1037_v9, %v1039_v10 }
  0x12   : > { %244 = vmax.xlane.f32.xlu2 %v243_v6  ;;  %v939_v17 = vpop.eup %938 }
  0x13   : > { %v227_v18 = vmul.f32 256.0, %v939_v17  ;;  %vm231_vm0 = vweird.f32 %v939_v17 }
  0x15   : > { %v228_v19 = vsub.f32 1.0, %v227_v18 }
  0x17   : > { %v229_v20 = vmul.f32 %v939_v17, %v228_v19 }
  0x19   : > { %221 = vadd.xlane.f32.xlu0 %v220_v11  ;;  %218 = vadd.xlane.f32.xlu1 %v217_v12  ;;  %v230_v21 = vadd.f32 %v939_v17, %v229_v20 }
  0x1a   : > { %215 = vadd.xlane.f32.xlu2 %v214_v13 }
  0x1b   : > { %v232_v22 = vsel %vm231_vm0, %v939_v17, %v230_v21 }
  0x21   : > { %241 = vmax.xlane.f32.xlu0 %v240_v14  ;;  %238 = vmax.xlane.f32.xlu1 %v237_v15 }
  0x84   : > { %v225_v23 = vpop.xlane.xlu0 %224  ;;  %v248_v24 = vpop.xlane.xlu1 %247 }
  0x85   : > { %v236_v25 = vmul.f32 %v232_v22, %v225_v23  ;;  %v245_v26 = vpop.xlane.xlu2 %244 }
  0x87   : > { %v253_v27 = vsel %vm249_vm1, %v236_v25, %v248_v24 }
  0x88   : > { %271 = vmatpush.msra.mxu0 %v253_v27 }
  0x8c   : > { %v222_v28 = vpop.xlane.xlu0 %221  ;;  %v219_v29 = vpop.xlane.xlu1 %218 }
  0x8d   : > { %v235_v30 = vmul.f32 %v232_v22, %v222_v28  ;;  %v216_v31 = vpop.xlane.xlu2 %215  ;;  %v234_v34 = vmul.f32 %v232_v22, %v219_v29 }
  0x8e   : > { %v233_v33 = vmul.f32 %v232_v22, %v216_v31 }
  0x8f   : > { %v252_v32 = vsel %vm249_vm1, %v235_v30, %v245_v26 }
  0x90   : > { %272 = vmatpush.msra.mxu0 %v252_v32 }
  0x94   : > { %v242_v35 = vpop.xlane.xlu0 %241  ;;  %v239_v36 = vpop.xlane.xlu1 %238 }
  0x95   : > { %v251_v37 = vsel %vm249_vm1, %v234_v34, %v242_v35  ;;  %v250_v38 = vsel %vm249_vm1, %v233_v33, %v239_v36 }
  0x96   : > { %273 = vmatpush.msra.mxu0 %v251_v37 }
  0x98   : > { %274 = vmatpush.msra.mxu0 %v250_v38 }
  0x99   : > { %908 = vmatmul.msk.f32.vlgmr.msra.gmra.mxu0 %vm255_vm2, %v254_v39 }
 0x116   : > { %v276_v40 = vpop.f32.mrf.mxu0 }
 0x117   : > { %v279_v41 = vmax.f32 %v276_v40, 0.0 }
 0x119   : > { %312 = vmatpush.msra.mxu1 %v279_v41 }
 0x11a   : > { %909 = vmatmul.msk.f32.vlgmr.msra.gmra.mxu1 %vm284_vm3, %v280_v42 }
 0x122   : > { %910 = vmatmul.msk.f32.gmra.mxu1 %vm284_vm3, %v281_v43 }
 0x12a   : > { %911 = vmatmul.msk.f32.gmra.mxu1 %vm284_vm3, %v282_v44 }
 0x132   : > { %912 = vmatmul.msk.f32.gmra.mxu1 %vm284_vm3, %v283_v45 }
 0x197   : > { %v314_v46 = vpop.f32.mrf.mxu1 }
 0x198   : > { %330 = vrot.lane.b32.xlu2 %v314_v46, %s975_s6 }
 0x19f   : > { %v317_v47 = vpop.f32.mrf.mxu1 }
 0x1a0   : > { %332 = vrot.lane.b32.xlu0 %v317_v47, %s975_s6 }
 0x1a7   : > { %v320_v48 = vpop.f32.mrf.mxu1 }
 0x1a8   : > { %334 = vrot.lane.b32.xlu1 %v320_v48, %s975_s6 }
 0x1af   : > { %v323_v49 = vpop.f32.mrf.mxu1 }
 0x1b0   : > { %336 = vrot.lane.b32.xlu2 %v323_v49, %s975_s6 }
 0x1f2   : > { %v331_v51 = vpop.permute.xlu2 %330 }
 0x1f3   : > { %v342_v52 = vadd.f32 %v331_v51, %v314_v46 }
 0x1f5   : > { %v913_v53 = vmul.f32 -1.442695, %v342_v52 }
 0x1f7   : > { %940 = vpow2.f32 %v913_v53 }
 0x1fd   : > { %v941_v54 = vpop.eup %940 }
 0x1fe   : > { %v358_v55 = vadd.f32 1.0, %v941_v54 }
 0x200   : > { %942 = vrcp.f32 %v358_v55  ;;  %v373_v60 = vand.u32 2147483648, %v358_v55  ;;  %v371_v63 = vand.u32 2147483647, %v358_v55  ;;  %vm367_vm5 = vweird.f32 %v358_v55 }
 0x202   : > { %v374_v6 = vor.u32 1.1754944e-38, %v373_v60  ;;  %vm372_vm7 = vcmp.eq.f32.partialorder %v371_v63, 8.507059e+37  ;;  %v619_v60 = vld [vmem:[%s1513_s3 + $0x3e0] sm:$0xff]  ;;  %v585_v63 = vld [vmem:[%s1513_s3 + $0x2d0] sm:$0xff] }
 0x206   : > { %v943_v56 = vpop.eup %942 }
 0x207   : > { %v363_v57 = vmul.f32 %v943_v56, %v358_v55  ;;  %vm368_vm4 = vweird.f32 %v943_v56  ;;  %v589_v55 = vld [vmem:[%s1513_s3 + $0x2f0] sm:$0xff] }
 0x208   : > { %vm369_vm6 = vmor %vm367_vm5, %vm368_vm4  ;;  %663 = vmatpush.msrb.mxu1 %v589_v55  ;;  %v561_v55 = vld [vmem:[%s1513_s3 + $0x210] sm:$0xff] }
 0x209   : > { %v364_v58 = vsub.f32 1.0, %v363_v57  ;;  %v525_v57 = vld [vmem:[%s1513_s3 + $0xf0] sm:$0xff] }
 0x20a   : > { %v337_v59 = vpop.permute.xlu2 %336  ;;  %623 = vmatpush.msra.mxu2 %v525_v57  ;;  %v497_v57 = vld [vmem:[%s1513_s3 + $0x10] sm:$0xff] }
 0x20b   : > { %v345_v61 = vadd.f32 %v337_v59, %v323_v49  ;;  %v365_v62 = vmul.f32 %v943_v56, %v364_v58  ;;  %v557_v58 = vld [vmem:[%s1513_s3 + $0x1f0] sm:$0xff]  ;;  %v587_v59 = vld [vmem:[%s1513_s3 + $0x2e0] sm:$0xff] }
 0x20c   : > { %643 = vmatpush.msra.mxu3 %v557_v58  ;;  %664 = vmatpush.msrb.mxu1 %v587_v59  ;;  %v529_v58 = vld [vmem:[%s1513_s3 + $0x110] sm:$0xff]  ;;  %v559_v59 = vld [vmem:[%s1513_s3 + $0x200] sm:$0xff] }
 0x20d   : > { %v916_v3 = vmul.f32 -1.442695, %v345_v61  ;;  %v366_v4 = vadd.f32 %v943_v56, %v365_v62  ;;  %v523_v61 = vld [vmem:[%s1513_s3 + $0xe0] sm:$0xff] }
 0x20e   : > { %v555_v62 = vld [vmem:[%s1513_s3 + $0x1e0] sm:$0xff]  ;;  %624 = vmatpush.msra.mxu2 %v523_v61  ;;  %665 = vmatpush.msrb.mxu1 %v585_v63  ;;  %v590_v61 = vld [vmem:[%s1513_s3 + $0x2f8] sm:$0xff] }
 0x20f   : > { %944 = vpow2.f32 %v916_v3  ;;  %v370_v11 = vsel %vm369_vm6, %v943_v56, %v366_v4  ;;  %v621_v56 = vld [vmem:[%s1513_s3 + $0x3f0] sm:$0xff]  ;;  %644 = vmatpush.msra.mxu3 %v555_v62  ;;  %v622_v62 = vld [vmem:[%s1513_s3 + $0x3f8] sm:$0xff]  ;;  %v495_v63 = vld [vmem:[%s1513_s3] sm:$0xff] }
 0x210   : > { %v375_v12 = vsel %vm372_vm7, %v374_v6, %v370_v11  ;;  %683 = vmatpush.msrb.mxu0 %v621_v56  ;;  %v617_v3 = vld [vmem:[%s1513_s3 + $0x3d0] sm:$0xff]  ;;  %v583_v11 = vld [vmem:[%s1513_s3 + $0x2c0] sm:$0xff] }
 0x211   : > { %424 = vperm.xlu0 %935, %v375_v12   ;;  %v521_v4 = vld [vmem:[%s1513_s3 + $0xd0] sm:$0xff]  ;;  %v615_v12 = vld [vmem:[%s1513_s3 + $0x3c0] sm:$0xff]  ;;  %666 = vmatpush.msrb.mxu1 %v583_v11  ;;  %v588_v11 = vld [vmem:[%s1513_s3 + $0x2e8] sm:$0xff] }
 0x212   : > { %v333_v13 = vpop.permute.xlu0 %332  ;;  %684 = vmatpush.msrb.mxu0 %v619_v60  ;;  %v553_v6 = vld [vmem:[%s1513_s3 + $0x1d0] sm:$0xff]  ;;  %625 = vmatpush.msra.mxu2 %v521_v4  ;;  %v591_v60 = vld [vmem:[%s1513_s3 + $0x300] sm:$0xff]  ;;  %v526_v4 = vld [vmem:[%s1513_s3 + $0xf8] sm:$0xff] }
 0x213   : > { %v343_v14 = vadd.f32 %v333_v13, %v317_v47  ;;  %645 = vmatpush.msra.mxu3 %v553_v6  ;;  %v519_v13 = vld [vmem:[%s1513_s3 + $0xc0] sm:$0xff]  ;;  %v593_v56 = vld [vmem:[%s1513_s3 + $0x310] sm:$0xff]  ;;  %v558_v6 = vld [vmem:[%s1513_s3 + $0x1f8] sm:$0xff] }
 0x214   : > { %685 = vmatpush.msrb.mxu0 %v617_v3  ;;  %626 = vmatpush.msra.mxu2 %v519_v13  ;;  %v527_v3 = vld [vmem:[%s1513_s3 + $0x100] sm:$0xff]  ;;  %v524_v13 = vld [vmem:[%s1513_s3 + $0xe8] sm:$0xff] }
 0x215   : > { %v945_v15 = vpop.eup %944  ;;  %v914_v16 = vmul.f32 -1.442695, %v343_v14  ;;  %v551_v14 = vld [vmem:[%s1513_s3 + $0x1c0] sm:$0xff] }
 0x216   : > { %v361_v17 = vadd.f32 1.0, %v945_v15  ;;  %686 = vmatpush.msrb.mxu0 %v615_v12  ;;  %v581_v15 = vld [vmem:[%s1513_s3 + $0x2b0] sm:$0xff]  ;;  %646 = vmatpush.msra.mxu3 %v551_v14  ;;  %v620_v12 = vld [vmem:[%s1513_s3 + $0x3e8] sm:$0xff] }
 0x217   : > { %946 = vpow2.f32 %v914_v16  ;;  %v613_v16 = vld [vmem:[%s1513_s3 + $0x3b0] sm:$0xff]  ;;  %667 = vmatpush.msrb.mxu1 %v581_v15  ;;  %v556_v14 = vld [vmem:[%s1513_s3 + $0x1e8] sm:$0xff]  ;;  %v586_v15 = vld [vmem:[%s1513_s3 + $0x2d8] sm:$0xff] }
 0x218   : > { %948 = vrcp.f32 %v361_v17  ;;  %vm412_vm13 = vweird.f32 %v361_v17  ;;  %v418_v44 = vand.u32 2147483648, %v361_v17  ;;  %v416_v47 = vand.u32 2147483647, %v361_v17  ;;  %687 = vmatpush.msrb.mxu0 %v613_v16  ;;  %v618_v16 = vld [vmem:[%s1513_s3 + $0x3d8] sm:$0xff] }
 0x21a   : > { %v335_v18 = vpop.permute.xlu1 %334  ;;  %v419_v51 = vor.u32 1.1754944e-38, %v418_v44  ;;  %vm417_vm3 = vcmp.eq.f32.partialorder %v416_v47, 8.507059e+37  ;;  %v599_v44 = vld [vmem:[%s1513_s3 + $0x340] sm:$0xff]  ;;  %v565_v47 = vld [vmem:[%s1513_s3 + $0x230] sm:$0xff] }
 0x21b   : > { %v344_v19 = vadd.f32 %v335_v18, %v320_v48  ;;  %v549_v18 = vld [vmem:[%s1513_s3 + $0x1b0] sm:$0xff] }
 0x21c   : > { %647 = vmatpush.msra.mxu3 %v549_v18  ;;  %v554_v18 = vld [vmem:[%s1513_s3 + $0x1d8] sm:$0xff] }
 0x21d   : > { %v947_v20 = vpop.eup %946  ;;  %v915_v21 = vmul.f32 -1.442695, %v344_v19  ;;  %v579_v19 = vld [vmem:[%s1513_s3 + $0x2a0] sm:$0xff] }
 0x21e   : > { %v359_v22 = vadd.f32 1.0, %v947_v20  ;;  %v949_v23 = vpop.eup %948  ;;  %v611_v20 = vld [vmem:[%s1513_s3 + $0x3a0] sm:$0xff]  ;;  %668 = vmatpush.msrb.mxu1 %v579_v19  ;;  %v584_v19 = vld [vmem:[%s1513_s3 + $0x2c8] sm:$0xff] }
 0x21f   : > { %950 = vpow2.f32 %v915_v21  ;;  %v408_v25 = vmul.f32 %v949_v23, %v361_v17  ;;  %vm413_vm12 = vweird.f32 %v949_v23  ;;  %v517_v17 = vld [vmem:[%s1513_s3 + $0xb0] sm:$0xff]  ;;  %688 = vmatpush.msrb.mxu0 %v611_v20  ;;  %v515_v21 = vld [vmem:[%s1513_s3 + $0xa0] sm:$0xff]  ;;  %v616_v20 = vld [vmem:[%s1513_s3 + $0x3c8] sm:$0xff] }
 0x220   : > { %952 = vrcp.f32 %v359_v22  ;;  %v388_v31 = vand.u32 2147483648, %v359_v22  ;;  %v386_v33 = vand.u32 2147483647, %v359_v22  ;;  %vm382_vm9 = vweird.f32 %v359_v22  ;;  %vm414_vm15 = vmor %vm412_vm13, %vm413_vm12  ;;  %627 = vmatpush.msra.mxu2 %v517_v17  ;;  %v522_v17 = vld [vmem:[%s1513_s3 + $0xd8] sm:$0xff] }
 0x221   : > { %v409_v30 = vsub.f32 1.0, %v408_v25  ;;  %v513_v25 = vld [vmem:[%s1513_s3 + $0x90] sm:$0xff] }
 0x222   : > { %v389_v37 = vor.u32 1.1754944e-38, %v388_v31  ;;  %vm387_vm11 = vcmp.eq.f32.partialorder %v386_v33, 8.507059e+37  ;;  %628 = vmatpush.msra.mxu2 %v515_v21  ;;  %v573_v31 = vld [vmem:[%s1513_s3 + $0x270] sm:$0xff]  ;;  %v520_v21 = vld [vmem:[%s1513_s3 + $0xc8] sm:$0xff] }
 0x223   : > { %v410_v35 = vmul.f32 %v949_v23, %v409_v30  ;;  %v543_v30 = vld [vmem:[%s1513_s3 + $0x180] sm:$0xff]  ;;  %v509_v33 = vld [vmem:[%s1513_s3 + $0x70] sm:$0xff] }
 0x224   : > { %629 = vmatpush.msra.mxu2 %v513_v25  ;;  %v518_v25 = vld [vmem:[%s1513_s3 + $0xb8] sm:$0xff] }
 0x225   : > { %v951_v24 = vpop.eup %950  ;;  %v411_v42 = vadd.f32 %v949_v23, %v410_v35  ;;  %v571_v35 = vld [vmem:[%s1513_s3 + $0x260] sm:$0xff] }
 0x226   : > { %v953_v26 = vpop.eup %952  ;;  %v360_v27 = vadd.f32 1.0, %v951_v24  ;;  %v609_v24 = vld [vmem:[%s1513_s3 + $0x390] sm:$0xff] }
 0x227   : > { %v378_v28 = vmul.f32 %v953_v26, %v359_v22  ;;  %vm383_vm8 = vweird.f32 %v953_v26  ;;  %v415_v49 = vsel %vm414_vm15, %v949_v23, %v411_v42  ;;  %v547_v22 = vld [vmem:[%s1513_s3 + $0x1a0] sm:$0xff]  ;;  %v577_v23 = vld [vmem:[%s1513_s3 + $0x290] sm:$0xff]  ;;  %689 = vmatpush.msrb.mxu0 %v609_v24  ;;  %v614_v24 = vld [vmem:[%s1513_s3 + $0x3b8] sm:$0xff] }
 0x228   : > { %954 = vrcp.f32 %v360_v27  ;;  %vm384_vm10 = vmor %vm382_vm9, %vm383_vm8  ;;  %v403_v43 = vand.u32 2147483648, %v360_v27  ;;  %v401_v46 = vand.u32 2147483647, %v360_v27  ;;  %vm397_vm0 = vweird.f32 %v360_v27  ;;  %648 = vmatpush.msra.mxu3 %v547_v22  ;;  %669 = vmatpush.msrb.mxu1 %v577_v23  ;;  %v537_v42 = vld [vmem:[%s1513_s3 + $0x150] sm:$0xff]  ;;  %v552_v22 = vld [vmem:[%s1513_s3 + $0x1c8] sm:$0xff] }
 0x229   : > { %v379_v29 = vsub.f32 1.0, %v378_v28  ;;  %v420_v54 = vsel %vm417_vm3, %v419_v51, %v415_v49  ;;  %v607_v28 = vld [vmem:[%s1513_s3 + $0x380] sm:$0xff]  ;;  %v501_v49 = vld [vmem:[%s1513_s3 + $0x30] sm:$0xff]  ;;  %v582_v23 = vld [vmem:[%s1513_s3 + $0x2b8] sm:$0xff] }
 0x22a   : > { %v404_v50 = vor.u32 1.1754944e-38, %v403_v43  ;;  %vm402_vm2 = vcmp.eq.f32.partialorder %v401_v46, 8.507059e+37  ;;  %690 = vmatpush.msrb.mxu0 %v607_v28  ;;  %v567_v43 = vld [vmem:[%s1513_s3 + $0x240] sm:$0xff]  ;;  %v612_v28 = vld [vmem:[%s1513_s3 + $0x3a8] sm:$0xff] }
 0x22b   : > { %v380_v32 = vmul.f32 %v953_v26, %v379_v29  ;;  %v511_v29 = vld [vmem:[%s1513_s3 + $0x80] sm:$0xff] }
 0x22c   : > { %630 = vmatpush.msra.mxu2 %v511_v29  ;;  %v535_v46 = vld [vmem:[%s1513_s3 + $0x140] sm:$0xff]  ;;  %v516_v29 = vld [vmem:[%s1513_s3 + $0xa8] sm:$0xff] }
 0x22d   : > { %v381_v34 = vadd.f32 %v953_v26, %v380_v32  ;;  %v605_v32 = vld [vmem:[%s1513_s3 + $0x370] sm:$0xff]  ;;  %v563_v51 = vld [vmem:[%s1513_s3 + $0x220] sm:$0xff] }
 0x22e   : > { %v955_v36 = vpop.eup %954  ;;  %691 = vmatpush.msrb.mxu0 %v605_v32  ;;  %631 = vmatpush.msra.mxu2 %v509_v33  ;;  %v610_v32 = vld [vmem:[%s1513_s3 + $0x398] sm:$0xff] }
 0x22f   : > { %v385_v38 = vsel %vm384_vm10, %v953_v26, %v381_v34  ;;  %v393_v39 = vmul.f32 %v955_v36, %v360_v27  ;;  %vm398_vm14 = vweird.f32 %v955_v36  ;;  %v545_v26 = vld [vmem:[%s1513_s3 + $0x190] sm:$0xff]  ;;  %v575_v27 = vld [vmem:[%s1513_s3 + $0x280] sm:$0xff]  ;;  %v514_v33 = vld [vmem:[%s1513_s3 + $0x98] sm:$0xff] }
 0x230   : > { %v390_v40 = vsel %vm387_vm11, %v389_v37, %v385_v38  ;;  %vm399_vm1 = vmor %vm397_vm0, %vm398_vm14  ;;  %649 = vmatpush.msra.mxu3 %v545_v26  ;;  %670 = vmatpush.msrb.mxu1 %v575_v27  ;;  %v541_v34 = vld [vmem:[%s1513_s3 + $0x170] sm:$0xff]  ;;  %v507_v37 = vld [vmem:[%s1513_s3 + $0x60] sm:$0xff] }
 0x231   : > { %429 = vperm.xlu2 %936, %v390_v40   ;;  %v394_v41 = vsub.f32 1.0, %v393_v39  ;;  %v539_v38 = vld [vmem:[%s1513_s3 + $0x160] sm:$0xff]  ;;  %v569_v39 = vld [vmem:[%s1513_s3 + $0x250] sm:$0xff]  ;;  %632 = vmatpush.msra.mxu2 %v507_v37  ;;  %v550_v26 = vld [vmem:[%s1513_s3 + $0x1b8] sm:$0xff] }
 0x232   : > { %650 = vmatpush.msra.mxu3 %v543_v30  ;;  %671 = vmatpush.msrb.mxu1 %v573_v31  ;;  %v601_v40 = vld [vmem:[%s1513_s3 + $0x350] sm:$0xff]  ;;  %v580_v27 = vld [vmem:[%s1513_s3 + $0x2a8] sm:$0xff]  ;;  %v578_v31 = vld [vmem:[%s1513_s3 + $0x298] sm:$0xff] }
 0x233   : > { %v395_v45 = vmul.f32 %v955_v36, %v394_v41  ;;  %v505_v41 = vld [vmem:[%s1513_s3 + $0x50] sm:$0xff]  ;;  %v548_v30 = vld [vmem:[%s1513_s3 + $0x1a8] sm:$0xff] }
 0x234   : > { %651 = vmatpush.msra.mxu3 %v541_v34  ;;  %672 = vmatpush.msrb.mxu1 %v571_v35  ;;  %v546_v34 = vld [vmem:[%s1513_s3 + $0x198] sm:$0xff]  ;;  %v576_v35 = vld [vmem:[%s1513_s3 + $0x288] sm:$0xff] }
 0x235   : > { %v396_v48 = vadd.f32 %v955_v36, %v395_v45  ;;  %v503_v45 = vld [vmem:[%s1513_s3 + $0x40] sm:$0xff]  ;;  %633 = vmatpush.msra.mxu2 %v505_v41  ;;  %v512_v37 = vld [vmem:[%s1513_s3 + $0x88] sm:$0xff]  ;;  %v510_v41 = vld [vmem:[%s1513_s3 + $0x78] sm:$0xff] }
 0x236   : > { %652 = vmatpush.msra.mxu3 %v539_v38  ;;  %673 = vmatpush.msrb.mxu1 %v569_v39  ;;  %v544_v38 = vld [vmem:[%s1513_s3 + $0x188] sm:$0xff]  ;;  %v574_v39 = vld [vmem:[%s1513_s3 + $0x278] sm:$0xff] }
 0x237   : > { %v400_v52 = vsel %vm399_vm1, %v955_v36, %v396_v48  ;;  %v603_v36 = vld [vmem:[%s1513_s3 + $0x360] sm:$0xff]  ;;  %v597_v48 = vld [vmem:[%s1513_s3 + $0x330] sm:$0xff]  ;;  %634 = vmatpush.msra.mxu2 %v503_v45  ;;  %v508_v45 = vld [vmem:[%s1513_s3 + $0x68] sm:$0xff] }
 0x238   : > { %v405_v53 = vsel %vm402_vm2, %v404_v50, %v400_v52  ;;  %692 = vmatpush.msrb.mxu0 %v603_v36  ;;  %653 = vmatpush.msra.mxu3 %v537_v42  ;;  %v533_v50 = vld [vmem:[%s1513_s3 + $0x130] sm:$0xff]  ;;  %v595_v52 = vld [vmem:[%s1513_s3 + $0x320] sm:$0xff]  ;;  %v608_v36 = vld [vmem:[%s1513_s3 + $0x388] sm:$0xff] }
 0x239   : > { %434 = vperm.xlu1 %937, %v405_v53   ;;  %439 = vperm.xlu2 %936, %v420_v54   ;;  %v499_v53 = vld [vmem:[%s1513_s3 + $0x20] sm:$0xff]  ;;  %v542_v42 = vld [vmem:[%s1513_s3 + $0x178] sm:$0xff] }
 0x23a   : > { %693 = vmatpush.msrb.mxu0 %v601_v40  ;;  %674 = vmatpush.msrb.mxu1 %v567_v43  ;;  %v531_v54 = vld [vmem:[%s1513_s3 + $0x120] sm:$0xff]  ;;  %v606_v40 = vld [vmem:[%s1513_s3 + $0x378] sm:$0xff]  ;;  %v572_v43 = vld [vmem:[%s1513_s3 + $0x268] sm:$0xff] }
 0x23b   : > { %654 = vmatpush.msra.mxu3 %v535_v46  ;;  %635 = vmatpush.msra.mxu2 %v501_v49  ;;  %v540_v46 = vld [vmem:[%s1513_s3 + $0x168] sm:$0xff] }
 0x23c   : > { %694 = vmatpush.msrb.mxu0 %v599_v44  ;;  %675 = vmatpush.msrb.mxu1 %v565_v47  ;;  %v604_v44 = vld [vmem:[%s1513_s3 + $0x368] sm:$0xff]  ;;  %v570_v47 = vld [vmem:[%s1513_s3 + $0x258] sm:$0xff] }
 0x23d   : > { %655 = vmatpush.msra.mxu3 %v533_v50  ;;  %636 = vmatpush.msra.mxu2 %v499_v53  ;;  %v506_v50 = vld [vmem:[%s1513_s3 + $0x58] sm:$0xff]  ;;  %v600_v53 = vld [vmem:[%s1513_s3 + $0x348] sm:$0xff] }
 0x23e   : > { %695 = vmatpush.msrb.mxu0 %v597_v48  ;;  %676 = vmatpush.msrb.mxu1 %v563_v51  ;;  %v602_v48 = vld [vmem:[%s1513_s3 + $0x358] sm:$0xff] }
 0x23f   : > { %656 = vmatpush.msra.mxu3 %v531_v54  ;;  %637 = vmatpush.msra.mxu2 %v497_v57  ;;  %v538_v51 = vld [vmem:[%s1513_s3 + $0x158] sm:$0xff]  ;;  %v504_v54 = vld [vmem:[%s1513_s3 + $0x48] sm:$0xff] }
 0x240   : > { %696 = vmatpush.msrb.mxu0 %v595_v52  ;;  %677 = vmatpush.msrb.mxu1 %v561_v55  ;;  %v568_v52 = vld [vmem:[%s1513_s3 + $0x248] sm:$0xff]  ;;  %v598_v57 = vld [vmem:[%s1513_s3 + $0x338] sm:$0xff] }
 0x241   : > { %657 = vmatpush.msra.mxu3 %v529_v58  ;;  %638 = vmatpush.msra.mxu2 %v495_v63  ;;  %v536_v55 = vld [vmem:[%s1513_s3 + $0x148] sm:$0xff]  ;;  %v502_v58 = vld [vmem:[%s1513_s3 + $0x38] sm:$0xff] }
 0x242   : > { %697 = vmatpush.msrb.mxu0 %v593_v56  ;;  %678 = vmatpush.msrb.mxu1 %v559_v59  ;;  %v566_v56 = vld [vmem:[%s1513_s3 + $0x238] sm:$0xff]  ;;  %v500_v63 = vld [vmem:[%s1513_s3 + $0x28] sm:$0xff] }
 0x243   : > { %658 = vmatpush.msra.mxu3 %v527_v3  ;;  %703 = vmatpush.msrb.mxu2 %v526_v4  ;;  %v534_v59 = vld [vmem:[%s1513_s3 + $0x138] sm:$0xff]  ;;  %v532_v3 = vld [vmem:[%s1513_s3 + $0x128] sm:$0xff] }
 0x244   : > { %698 = vmatpush.msrb.mxu0 %v591_v60  ;;  %743 = vmatpush.msra.mxu1 %v590_v61  ;;  %v564_v60 = vld [vmem:[%s1513_s3 + $0x228] sm:$0xff]  ;;  %v562_v4 = vld [vmem:[%s1513_s3 + $0x218] sm:$0xff] }
 0x245   : > { %723 = vmatpush.msrb.mxu3 %v558_v6  ;;  %704 = vmatpush.msrb.mxu2 %v524_v13  ;;  %v596_v61 = vld [vmem:[%s1513_s3 + $0x328] sm:$0xff]  ;;  %v594_v6 = vld [vmem:[%s1513_s3 + $0x318] sm:$0xff] }
 0x246   : > { %763 = vmatpush.msra.mxu0 %v622_v62  ;;  %744 = vmatpush.msra.mxu1 %v588_v11  ;;  %v977_v62 = vmov 32.0   ;;  %v498_v11 = vld [vmem:[%s1513_s3 + $0x18] sm:$0xff]  ;;  %v560_v13 = vld [vmem:[%s1513_s3 + $0x208] sm:$0xff] }
 0x247   : > { %724 = vmatpush.msrb.mxu3 %v556_v14  ;;  %705 = vmatpush.msrb.mxu2 %v522_v17  ;;  %956 = vrcp.f32 %v977_v62  ;;  %v592_v14 = vld [vmem:[%s1513_s3 + $0x308] sm:$0xff] }
 0x248   : > { %764 = vmatpush.msra.mxu0 %v620_v12  ;;  %745 = vmatpush.msra.mxu1 %v586_v15  ;;  %v530_v12 = vld [vmem:[%s1513_s3 + $0x118] sm:$0xff]  ;;  %v528_v17 = vld [vmem:[%s1513_s3 + $0x108] sm:$0xff] }
 0x249   : > { %725 = vmatpush.msrb.mxu3 %v554_v18  ;;  %706 = vmatpush.msrb.mxu2 %v520_v21 }
 0x24a   : > { %765 = vmatpush.msra.mxu0 %v618_v16  ;;  %746 = vmatpush.msra.mxu1 %v584_v19  ;;  %v496_v16 = vld [vmem:[%s1513_s3 + $0x8] sm:$0xff] }
 0x24b   : > { %726 = vmatpush.msrb.mxu3 %v552_v22  ;;  %707 = vmatpush.msrb.mxu2 %v518_v25 }
 0x24c   : > { %766 = vmatpush.msra.mxu0 %v616_v20  ;;  %747 = vmatpush.msra.mxu1 %v582_v23 }
 0x24d   : > { %727 = vmatpush.msrb.mxu3 %v550_v26  ;;  %708 = vmatpush.msrb.mxu2 %v516_v29  ;;  %v957_v19 = vpop.eup %956 }
 0x24e   : > { %767 = vmatpush.msra.mxu0 %v614_v24  ;;  %748 = vmatpush.msra.mxu1 %v580_v27  ;;  %v469_v26 = vmul.f32 32.0, %v957_v19  ;;  %vm473_vm4 = vweird.f32 %v957_v19 }
 0x24f   : > { %728 = vmatpush.msrb.mxu3 %v548_v30  ;;  %709 = vmatpush.msrb.mxu2 %v514_v33 }
 0x250   : > { %768 = vmatpush.msra.mxu0 %v612_v28  ;;  %749 = vmatpush.msra.mxu1 %v578_v31  ;;  %v470_v31 = vsub.f32 1.0, %v469_v26 }
 0x251   : > { %729 = vmatpush.msrb.mxu3 %v546_v34  ;;  %710 = vmatpush.msrb.mxu2 %v512_v37 }
 0x252   : > { %769 = vmatpush.msra.mxu0 %v610_v32  ;;  %750 = vmatpush.msra.mxu1 %v576_v35 }
 0x253   : > { %730 = vmatpush.msrb.mxu3 %v544_v38  ;;  %711 = vmatpush.msrb.mxu2 %v510_v41 }
 0x254   : > { %770 = vmatpush.msra.mxu0 %v608_v36  ;;  %751 = vmatpush.msra.mxu1 %v574_v39  ;;  %v471_v39 = vmul.f32 %v957_v19, %v470_v31 }
 0x255   : > { %731 = vmatpush.msrb.mxu3 %v542_v42  ;;  %712 = vmatpush.msrb.mxu2 %v508_v45 }
 0x256   : > { %771 = vmatpush.msra.mxu0 %v606_v40  ;;  %752 = vmatpush.msra.mxu1 %v572_v43 }
 0x257   : > { %732 = vmatpush.msrb.mxu3 %v540_v46  ;;  %713 = vmatpush.msrb.mxu2 %v506_v50 }
 0x258   : > { %772 = vmatpush.msra.mxu0 %v604_v44  ;;  %753 = vmatpush.msra.mxu1 %v570_v47 }
 0x259   : > { %733 = vmatpush.msrb.mxu3 %v538_v51  ;;  %714 = vmatpush.msrb.mxu2 %v504_v54 }
 0x25a   : > { %773 = vmatpush.msra.mxu0 %v602_v48  ;;  %754 = vmatpush.msra.mxu1 %v568_v52  ;;  %v472_v48 = vadd.f32 %v957_v19, %v471_v39 }
 0x25b   : > { %734 = vmatpush.msrb.mxu3 %v536_v55  ;;  %715 = vmatpush.msrb.mxu2 %v502_v58 }
 0x25c   : > { %774 = vmatpush.msra.mxu0 %v600_v53  ;;  %755 = vmatpush.msra.mxu1 %v566_v56 }
 0x25d   : > { %735 = vmatpush.msrb.mxu3 %v534_v59  ;;  %716 = vmatpush.msrb.mxu2 %v500_v63 }
 0x25e   : > { %775 = vmatpush.msra.mxu0 %v598_v57  ;;  %756 = vmatpush.msra.mxu1 %v564_v60  ;;  %v474_v57 = vsel %vm473_vm4, %v957_v19, %v472_v48 }
 0x25f   : > { %736 = vmatpush.msrb.mxu3 %v532_v3  ;;  %717 = vmatpush.msrb.mxu2 %v498_v11 }
 0x260   : > { %776 = vmatpush.msra.mxu0 %v596_v61  ;;  %757 = vmatpush.msra.mxu1 %v562_v4 }
 0x261   : > { %737 = vmatpush.msrb.mxu3 %v530_v12  ;;  %718 = vmatpush.msrb.mxu2 %v496_v16 }
 0x262   : > { %777 = vmatpush.msra.mxu0 %v594_v6  ;;  %758 = vmatpush.msra.mxu1 %v560_v13 }
 0x263   : > { %738 = vmatpush.msrb.mxu3 %v528_v17 }
 0x264   : > { %778 = vmatpush.msra.mxu0 %v592_v14 }
 0x283   : > { %v425_v18 = vpop.permute.xlu0 %424 }
 0x284   : > { %v1467_v24 = vmul.f32 %v425_v18, %v1037_v9  ;;  %v1470_v25 = vmul.f32 %v425_v18, %v1039_v10 }
 0x28b   : > { %v430_v49 = vpop.permute.xlu2 %429 }
 0x28c   : > { %v1455_v20 = vmul.f32 %v430_v49, %v1033_v7  ;;  %v1458_v21 = vmul.f32 %v430_v49, %v1035_v8 }
 0x28e   : > { %v450_v8 = vadd.f32 %v1455_v20, %v1467_v24 }
 0x293   : > { %v440_v15 = vpop.permute.xlu2 %439 }
 0x294   : > { %v1461_v22 = vmul.f32 %v440_v15, %v1019_v0  ;;  %v1464_v23 = vmul.f32 %v440_v15, %v1021_v1  ;;  %v459_v0 = vadd.f32 %v1458_v21, %v1470_v25 }
 0x296   : > { %v478_v9 = vmax.f32 %v1455_v20, %v1461_v22  ;;  %v487_v10 = vmax.f32 %v1458_v21, %v1464_v23 }
 0x2ab   : > { %v435_v7 = vpop.permute.xlu1 %434 }
 0x2ac   : > { %v1477_v27 = vmul.f32 %v435_v7, %v1023_v2  ;;  %v1480_v1 = vmul.f32 %v435_v7, %v1029_v5 }
 0x2ae   : > { %v451_v28 = vadd.f32 %v450_v8, %v1477_v27  ;;  %v460_v29 = vadd.f32 %v459_v0, %v1480_v1  ;;  %v477_v30 = vmax.f32 %v1467_v24, %v1477_v27  ;;  %v486_v2 = vmax.f32 %v1470_v25, %v1480_v1 }
 0x2b0   : > { %v452_v5 = vadd.f32 %v451_v28, %v1461_v22  ;;  %v461_v32 = vadd.f32 %v460_v29, %v1464_v23  ;;  %v479_v33 = vmax.f32 %v477_v30, %v478_v9  ;;  %v488_v34 = vmax.f32 %v486_v2, %v487_v10 }
 0x2b2   : > { %v453_v35 = vrot.slane %v452_v5, 4  ;;  %v462_v36 = vrot.slane %v461_v32, 4  ;;  %v480_v37 = vrot.slane %v479_v33, 4  ;;  %v489_v38 = vrot.slane %v488_v34, 4 }
 0x2b4   : > { %v481_v40 = vmax.f32 %v479_v33, %v480_v37  ;;  %v490_v41 = vmax.f32 %v488_v34, %v489_v38  ;;  %v454_v42 = vadd.f32 %v453_v35, %v452_v5  ;;  %v463_v43 = vadd.f32 %v462_v36, %v461_v32 }
 0x2b6   : > { %v482_v44 = vrot.slane %v481_v40, 2  ;;  %v491_v45 = vrot.slane %v490_v41, 2  ;;  %v455_v46 = vrot.slane %v454_v42, 2  ;;  %v464_v47 = vrot.slane %v463_v43, 2 }
 0x2b8   : > { %v483_v49 = vmax.f32 %v481_v40, %v482_v44  ;;  %v492_v50 = vmax.f32 %v490_v41, %v491_v45  ;;  %v456_v51 = vadd.f32 %v455_v46, %v454_v42  ;;  %v465_v52 = vadd.f32 %v464_v47, %v463_v43 }
 0x2ba   : > { %v484_v53 = vrot.slane %v483_v49, 1  ;;  %v493_v54 = vrot.slane %v492_v50, 1  ;;  %v457_v55 = vrot.slane %v456_v51, 1  ;;  %v466_v56 = vrot.slane %v465_v52, 1 }
 0x2bc   : > { %v485_v58 = vmax.f32 %v483_v49, %v484_v53  ;;  %v494_v59 = vmax.f32 %v492_v50, %v493_v54  ;;  %v458_v60 = vadd.f32 %v457_v55, %v456_v51  ;;  %v467_v61 = vadd.f32 %v466_v56, %v465_v52 }
 0x2be   : > { %679 = vmatmul.f32.vlgmr.msrb.gmra.mxu1 %v485_v58  ;;  %699 = vmatmul.f32.vlgmr.msrb.gmra.mxu0 %v494_v59  ;;  %v475_v62 = vmul.f32 %v474_v57, %v458_v60  ;;  %v476_v63 = vmul.f32 %v474_v57, %v467_v61 }
 0x2c0   : > { %639 = vmatmul.f32.vlgmr.msra.gmra.mxu2 %v475_v62  ;;  %659 = vmatmul.f32.vlgmr.msra.gmra.mxu3 %v476_v63 }
 0x2c6   : > { %759 = vmatmul.f32.vlgmr.msra.gmra.mxu1 %v485_v58  ;;  %779 = vmatmul.f32.vlgmr.msra.gmra.mxu0 %v494_v59 }
 0x2c8   : > { %719 = vmatmul.f32.vlgmr.msrb.gmra.mxu2 %v475_v62  ;;  %739 = vmatmul.f32.vlgmr.msrb.gmra.mxu3 %v476_v63 }
 0x33b   : > { %v680_v3 = vpop.f32.mrf.mxu1  ;;  %v700_v12 = vpop.f32.mrf.mxu0 }
 0x343   : > { %v640_v4 = vpop.f32.mrf.mxu2  ;;  %v660_v6 = vpop.f32.mrf.mxu3 }
 0x344   : > { %v661_v11 = vadd.f32 %v660_v6, %v640_v4  ;;  %v760_v19 = vpop.f32.mrf.mxu1  ;;  %v780_v26 = vpop.f32.mrf.mxu0 }
 0x346   : > { %v681_v13 = vadd.f32 %v680_v3, %v661_v11 }
 0x348   : > { %v701_v14 = vadd.f32 %v700_v12, %v681_v13 }
 0x34a   : > { %v917_v15 = vmul.f32 -1.442695, %v701_v14 }
 0x34b   : > { %v720_v16 = vpop.f32.mrf.mxu2  ;;  %v740_v17 = vpop.f32.mrf.mxu3 }
 0x34c   : > { %958 = vpow2.f32 %v917_v15  ;;  %v741_v18 = vadd.f32 %v740_v17, %v720_v16 }
 0x34e   : > { %v761_v7 = vadd.f32 %v760_v19, %v741_v18 }
 0x350   : > { %v781_v8 = vadd.f32 %v780_v26, %v761_v7 }
 0x352   : > { %v959_v0 = vpop.eup %958  ;;  %v918_v9 = vmul.f32 -1.442695, %v781_v8 }
 0x353   : > { %v789_v10 = vadd.f32 1.0, %v959_v0 }
 0x354   : > { %960 = vpow2.f32 %v918_v9 }
 0x355   : > { %962 = vrcp.f32 %v789_v10  ;;  %v802_v5 = vand.u32 2147483648, %v789_v10  ;;  %v800_v33 = vand.u32 2147483647, %v789_v10  ;;  %vm796_vm6 = vweird.f32 %v789_v10 }
 0x357   : > { %v803_v36 = vor.u32 1.1754944e-38, %v802_v5  ;;  %vm801_vm8 = vcmp.eq.f32.partialorder %v800_v33, 8.507059e+37 }
 0x35a   : > { %v961_v28 = vpop.eup %960 }
 0x35b   : > { %v963_v29 = vpop.eup %962  ;;  %v790_v30 = vadd.f32 1.0, %v961_v28 }
 0x35c   : > { %v792_v2 = vmul.f32 %v963_v29, %v789_v10  ;;  %vm797_vm5 = vweird.f32 %v963_v29 }
 0x35d   : > { %964 = vrcp.f32 %v790_v30  ;;  %vm798_vm7 = vmor %vm796_vm6, %vm797_vm5  ;;  %v817_v44 = vand.u32 2147483648, %v790_v30  ;;  %v815_v46 = vand.u32 2147483647, %v790_v30  ;;  %vm811_vm10 = vweird.f32 %v790_v30 }
 0x35e   : > { %v793_v31 = vsub.f32 1.0, %v792_v2 }
 0x35f   : > { %v818_v50 = vor.u32 1.1754944e-38, %v817_v44  ;;  %vm816_vm12 = vcmp.eq.f32.partialorder %v815_v46, 8.507059e+37 }
 0x360   : > { %v794_v32 = vmul.f32 %v963_v29, %v793_v31 }
 0x362   : > { %v795_v34 = vadd.f32 %v963_v29, %v794_v32 }
 0x363   : > { %v965_v35 = vpop.eup %964 }
 0x364   : > { %v799_v37 = vsel %vm798_vm7, %v963_v29, %v795_v34  ;;  %v807_v38 = vmul.f32 %v965_v35, %v790_v30  ;;  %vm812_vm9 = vweird.f32 %v965_v35 }
 0x365   : > { %v804_v39 = vsel %vm801_vm8, %v803_v36, %v799_v37  ;;  %vm813_vm11 = vmor %vm811_vm10, %vm812_vm9 }
 0x366   : > { %v821_v40 = vperm.slane %v804_v39, 0  ;;  %v808_v41 = vsub.f32 1.0, %v807_v38 }
 0x368   : > { %v823_v42 = vmul.f32 %v821_v40, %v1467_v24  ;;  %v825_v43 = vmul.f32 %v821_v40, %v1455_v20  ;;  %v809_v45 = vmul.f32 %v965_v35, %v808_v41  ;;  %v827_v47 = vmul.f32 %v821_v40, %v1477_v27 }
 0x369   : > { %v829_v48 = vmul.f32 %v821_v40, %v1461_v22 }
 0x36a   : > { %831 = vst [vmem:[%s204_s12] sm:$0xff] %v823_v42  ;;  %v810_v49 = vadd.f32 %v965_v35, %v809_v45 }
 0x36b   : > { %833 = vst [vmem:[%s204_s12 + $0x10] sm:$0xff] %v825_v43 }
 0x36c   : > { %835 = vst [vmem:[%s204_s12 + $0x20] sm:$0xff] %v827_v47  ;;  %v814_v51 = vsel %vm813_vm11, %v965_v35, %v810_v49 }
 0x36d   : > { %837 = vst [vmem:[%s204_s12 + $0x30] sm:$0xff] %v829_v48  ;;  %v819_v24 = vsel %vm816_vm12, %v818_v50, %v814_v51 }
 0x36e   : > { %v822_v20 = vperm.slane %v819_v24, 0 }
 0x370   : > { %v824_v52 = vmul.f32 %v822_v20, %v1470_v25  ;;  %v826_v53 = vmul.f32 %v822_v20, %v1458_v21  ;;  %v828_v27 = vmul.f32 %v822_v20, %v1480_v1  ;;  %v830_v22 = vmul.f32 %v822_v20, %v1464_v23 }
 0x372   : > { %832 = vst [vmem:[%s204_s12 + $0x8] sm:$0xff] %v824_v52 }
 0x373   : > { %834 = vst [vmem:[%s204_s12 + $0x18] sm:$0xff] %v826_v53 }
 0x374   : > { %836 = vst [vmem:[%s204_s12 + $0x28] sm:$0xff] %v828_v27 }
 0x375   : > { %838 = vst [vmem:[%s204_s12 + $0x38] sm:$0xff] %v830_v22 }
 0x376 PF: > { %s14_s15 = sadd.s32 1, %s972_s15  }
 0x377   : > { %p11_p4 = scmp.ge.s32.totalorder %s14_s15, 4  }
 0x379   :  { %13 = sbr.rel (!%p11_p4) target bundleno = 1 (0x1), region = 66 }

</bundles_post_ra>
